<compile_context>
chip_gen: v7x
topology: tpu7x:2x2x1
jax: 0.10.0
libtpu: 0.0.40
codegen_flags: <defaults>
</compile_context>

<pallas_src>
import functools

import jax
import jax.numpy as jnp
import numpy as np
from jax import lax
from jax.experimental import pallas as pl
from jax.experimental.pallas import tpu as pltpu


def _codec_embed_kernel(idx_ref, tab_ref, out_ref, *, tile_n, repeats, nc, vocab):
    # idx_ref : SMEM scalar-prefetch ref, [B, NC] int32 codec indices
    # tab_ref : VMEM, (V, D) full embedding table (resident across the grid)
    # out_ref : VMEM, (1, tile_n * repeats, D) output block
    b = pl.program_id(0)
    n = pl.program_id(1)
    base = n * tile_n
    r = repeats
    d = tab_ref.shape[1]

    # Static (unrolled) loop over the codec positions covered by this block.
    # Each iteration: one scalar SMEM read, one dynamic (1, D) row slice from
    # the VMEM-resident table, one sublane-broadcast store of R rows.
    for i in range(tile_n):
        # Clamp the position so the tail block (NC % tile_n != 0) re-reads the
        # last valid index; those rows land past NC*R and are clipped by the
        # masked output writeback.
        pos = jnp.minimum(base + i, nc - 1)
        code = jnp.clip(idx_ref[b, pos], 0, vocab - 1)
        row = tab_ref[pl.ds(code, 1), :]                       # (1, D)
        out_ref[:, pl.ds(i * r, r), :] = jnp.broadcast_to(row, (r, d))[None]


def _pick_tile_n(nc, repeats, d, itemsize):
    """Codec positions per grid step: big, sublane-dense output blocks."""
    tile = max(1, 512 // repeats)                 # target ~512 output rows/step
    tile = min(tile, 128)                         # bound unrolled kernel size
    max_by_bytes = max(1, (4 * 1024 * 1024) // (repeats * d * itemsize))
    tile = min(tile, max_by_bytes, nc)
    if tile < nc:
        # Keep the output block's sublane count a multiple of 8.
        while tile > 1 and (tile * repeats) % 8 != 0:
            tile -= 1
    return tile


def codec_embedding(codec, table, repeats, drop_text=False):
    """Pallas implementation of CodecEmbedding.forward.

    codec : int [B, NC]
    table : float32 [V, D]   (V = codec_num_embeds + 1)
    returns float32 [B, NC * repeats, D]
    """
    codec = codec.astype(jnp.int32)
    B, NC = codec.shape
    V, D = table.shape
    R = int(repeats)
    M = NC * R

    if drop_text:
        # Every index becomes 0 -> every output row is table[0].  A single
        # broadcast is a full-bandwidth write; no gather kernel needed.
        return jnp.broadcast_to(table[0][None, None, :], (B, M, D))

    itemsize = jnp.dtype(table.dtype).itemsize
    tile_n = _pick_tile_n(NC, R, D, itemsize)
    grid = (B, pl.cdiv(NC, tile_n))

    # VMEM budget: resident table (double-buffered by the pipeline) plus
    # double-buffered output blocks.  Only raise the scoped limit if needed,
    # and never above v7x's 64 MiB physical VMEM.
    vmem_need = int(1.5 * (2 * V * D * itemsize + 2 * tile_n * R * D * itemsize))
    cp_kwargs = {"dimension_semantics": ("parallel", "parallel")}
    if vmem_need > 24 * 1024 * 1024:
        cp_kwargs["vmem_limit_bytes"] = min(max(vmem_need, 32 * 1024 * 1024),
                                            64 * 1024 * 1024)

    kernel = functools.partial(
        _codec_embed_kernel, tile_n=tile_n, repeats=R, nc=NC, vocab=V)

    out = pl.pallas_call(
        kernel,
        out_shape=jax.ShapeDtypeStruct((B, M, D), table.dtype),
        grid_spec=pltpu.PrefetchScalarGridSpec(
            num_scalar_prefetch=1,
            grid=grid,
            in_specs=[
                # Whole table resident in VMEM: constant block index means it
                # is fetched once and reused for all grid steps.
                pl.BlockSpec((V, D), lambda b, n, idx: (0, 0)),
            ],
            out_specs=pl.BlockSpec((1, tile_n * R, D),
                                   lambda b, n, idx: (b, n, 0)),
        ),
        compiler_params=pltpu.CompilerParams(**cp_kwargs),
    )(codec, table)
    return out


class CodecEmbedding:
    """Mirror of the PyTorch module (parameters built deterministically)."""

    def __init__(self, codec_num_embeds, codec_dim, repeats, key):
        self.repeats = repeats
        # nn.Embedding(codec_num_embeds + 1, codec_dim) weight ~ N(0, 1)
        self.codec_embed = jax.random.normal(
            key, (codec_num_embeds + 1, codec_dim), dtype=jnp.float32)

    def __call__(self, codec, seq_len, drop_text=False):
        # seq_len is unused by the reference forward pass as well.
        del seq_len
        return codec_embedding(codec, self.codec_embed, self.repeats,
                               drop_text=drop_text)


if __name__ == "__main__":
    key = jax.random.PRNGKey(0)
    k_tab, k_idx = jax.random.split(key)

    codec_num_embeds = 16
    codec_dim = 32
    repeats = 3
    B, NC = 2, 8

    module = CodecEmbedding(codec_num_embeds, codec_dim, repeats, k_tab)
    codec = jax.random.randint(k_idx, (B, NC), 0, codec_num_embeds + 1,
                               dtype=jnp.int32)

    out = module(codec, seq_len=NC * repeats, drop_text=False)
    out = jax.block_until_ready(out)

    # Pure-JAX reference: embedding lookup + repeat_interleave along dim=1.
    ref = jnp.repeat(module.codec_embed[codec], repeats, axis=1)
    np.testing.assert_allclose(np.asarray(out), np.asarray(ref), rtol=0, atol=0)

    # drop_text path (all indices -> row 0).
    out_drop = jax.block_until_ready(
        module(codec, seq_len=NC * repeats, drop_text=True))
    ref_drop = jnp.repeat(
        module.codec_embed[jnp.zeros_like(codec)], repeats, axis=1)
    np.testing.assert_allclose(np.asarray(out_drop), np.asarray(ref_drop),
                               rtol=0, atol=0)

    assert out.shape == (B, NC * repeats, codec_dim)
    print("KERNEL_OK")
</pallas_src>

<mosaic_0001>
module attributes {stable_mosaic.version = 11 : i64} {
  func.func @_codec_embed_kernel(%arg0: i32, %arg1: i32, %arg2: memref<2x8xi32, #tpu.memory_space<smem>>, %arg3: memref<17x32xf32, #tpu.memory_space<vmem>>, %arg4: memref<1x24x32xf32, #tpu.memory_space<vmem>>) attributes {dimension_semantics = [#tpu.dimension_semantics<parallel>, #tpu.dimension_semantics<parallel>], iteration_bounds = array<i64: 2, 1>, scalar_prefetch = 1 : i64, scratch_operands = 0 : i64, tpu.core_type = #tpu.core_type<tc>, window_params = [{pipeline_mode = #tpu.pipeline_mode<synchronous>, transform_indices = @transform_0, window_bounds = array<i64: 17, 32>}, {transform_indices = @transform_1, window_bounds = array<i64: 1, 24, 32>}]} {
    %c8_i32 = arith.constant 8 : i32
    %0 = arith.muli %arg1, %c8_i32 : i32
    %c0_i32 = arith.constant 0 : i32
    %1 = arith.addi %0, %c0_i32 : i32
    %c7_i32 = arith.constant 7 : i32
    %2 = arith.minsi %1, %c7_i32 : i32
    %3 = arith.index_cast %arg0 : i32 to index
    %4 = arith.index_cast %2 : i32 to index
    %5 = memref.load %arg2[%3, %4] : memref<2x8xi32, #tpu.memory_space<smem>>
    %c0_i32_0 = arith.constant 0 : i32
    %c16_i32 = arith.constant 16 : i32
    %6 = arith.maxsi %c0_i32_0, %5 : i32
    %7 = arith.minsi %c16_i32, %6 : i32
    %8 = arith.index_cast %7 : i32 to index
    %c0 = arith.constant 0 : index
    %9 = vector.load %arg3[%8, %c0] : memref<17x32xf32, #tpu.memory_space<vmem>>, vector<1x32xf32>
    %10 = vector.shape_cast %9 : vector<1x32xf32> to vector<1x32xf32>
    %11 = vector.broadcast %10 : vector<1x32xf32> to vector<3x32xf32>
    %12 = vector.shape_cast %11 : vector<3x32xf32> to vector<1x3x32xf32>
    %c0_1 = arith.constant 0 : index
    %c0_2 = arith.constant 0 : index
    %c0_3 = arith.constant 0 : index
    %13 = vector.load %arg4[%c0_1, %c0_2, %c0_3] : memref<1x24x32xf32, #tpu.memory_space<vmem>>, vector<1x3x32xf32>
    tpu.vector_store %arg4[%c0_1, %c0_2, %c0_3], %12 {strides = array<i32>} : memref<1x24x32xf32, #tpu.memory_space<vmem>>, vector<1x3x32xf32>,
    %c1_i32 = arith.constant 1 : i32
    %14 = arith.addi %0, %c1_i32 : i32
    %c7_i32_4 = arith.constant 7 : i32
    %15 = arith.minsi %14, %c7_i32_4 : i32
    %16 = arith.index_cast %arg0 : i32 to index
    %17 = arith.index_cast %15 : i32 to index
    %18 = memref.load %arg2[%16, %17] : memref<2x8xi32, #tpu.memory_space<smem>>
    %c0_i32_5 = arith.constant 0 : i32
    %c16_i32_6 = arith.constant 16 : i32
    %19 = arith.maxsi %c0_i32_5, %18 : i32
    %20 = arith.minsi %c16_i32_6, %19 : i32
    %21 = arith.index_cast %20 : i32 to index
    %c0_7 = arith.constant 0 : index
    %22 = vector.load %arg3[%21, %c0_7] : memref<17x32xf32, #tpu.memory_space<vmem>>, vector<1x32xf32>
    %23 = vector.shape_cast %22 : vector<1x32xf32> to vector<1x32xf32>
    %24 = vector.broadcast %23 : vector<1x32xf32> to vector<3x32xf32>
    %25 = vector.shape_cast %24 : vector<3x32xf32> to vector<1x3x32xf32>
    %c0_8 = arith.constant 0 : index
    %c3 = arith.constant 3 : index
    %c0_9 = arith.constant 0 : index
    %26 = vector.load %arg4[%c0_8, %c3, %c0_9] : memref<1x24x32xf32, #tpu.memory_space<vmem>>, vector<1x3x32xf32>
    tpu.vector_store %arg4[%c0_8, %c3, %c0_9], %25 {strides = array<i32>} : memref<1x24x32xf32, #tpu.memory_space<vmem>>, vector<1x3x32xf32>,
    %c2_i32 = arith.constant 2 : i32
    %27 = arith.addi %0, %c2_i32 : i32
    %c7_i32_10 = arith.constant 7 : i32
    %28 = arith.minsi %27, %c7_i32_10 : i32
    %29 = arith.index_cast %arg0 : i32 to index
    %30 = arith.index_cast %28 : i32 to index
    %31 = memref.load %arg2[%29, %30] : memref<2x8xi32, #tpu.memory_space<smem>>
    %c0_i32_11 = arith.constant 0 : i32
    %c16_i32_12 = arith.constant 16 : i32
    %32 = arith.maxsi %c0_i32_11, %31 : i32
    %33 = arith.minsi %c16_i32_12, %32 : i32
    %34 = arith.index_cast %33 : i32 to index
    %c0_13 = arith.constant 0 : index
    %35 = vector.load %arg3[%34, %c0_13] : memref<17x32xf32, #tpu.memory_space<vmem>>, vector<1x32xf32>
    %36 = vector.shape_cast %35 : vector<1x32xf32> to vector<1x32xf32>
    %37 = vector.broadcast %36 : vector<1x32xf32> to vector<3x32xf32>
    %38 = vector.shape_cast %37 : vector<3x32xf32> to vector<1x3x32xf32>
    %c0_14 = arith.constant 0 : index
    %c6 = arith.constant 6 : index
    %c0_15 = arith.constant 0 : index
    %39 = vector.load %arg4[%c0_14, %c6, %c0_15] : memref<1x24x32xf32, #tpu.memory_space<vmem>>, vector<1x3x32xf32>
    tpu.vector_store %arg4[%c0_14, %c6, %c0_15], %38 {strides = array<i32>} : memref<1x24x32xf32, #tpu.memory_space<vmem>>, vector<1x3x32xf32>,
    %c3_i32 = arith.constant 3 : i32
    %40 = arith.addi %0, %c3_i32 : i32
    %c7_i32_16 = arith.constant 7 : i32
    %41 = arith.minsi %40, %c7_i32_16 : i32
    %42 = arith.index_cast %arg0 : i32 to index
    %43 = arith.index_cast %41 : i32 to index
    %44 = memref.load %arg2[%42, %43] : memref<2x8xi32, #tpu.memory_space<smem>>
    %c0_i32_17 = arith.constant 0 : i32
    %c16_i32_18 = arith.constant 16 : i32
    %45 = arith.maxsi %c0_i32_17, %44 : i32
    %46 = arith.minsi %c16_i32_18, %45 : i32
    %47 = arith.index_cast %46 : i32 to index
    %c0_19 = arith.constant 0 : index
    %48 = vector.load %arg3[%47, %c0_19] : memref<17x32xf32, #tpu.memory_space<vmem>>, vector<1x32xf32>
    %49 = vector.shape_cast %48 : vector<1x32xf32> to vector<1x32xf32>
    %50 = vector.broadcast %49 : vector<1x32xf32> to vector<3x32xf32>
    %51 = vector.shape_cast %50 : vector<3x32xf32> to vector<1x3x32xf32>
    %c0_20 = arith.constant 0 : index
    %c9 = arith.constant 9 : index
    %c0_21 = arith.constant 0 : index
    %52 = vector.load %arg4[%c0_20, %c9, %c0_21] : memref<1x24x32xf32, #tpu.memory_space<vmem>>, vector<1x3x32xf32>
    tpu.vector_store %arg4[%c0_20, %c9, %c0_21], %51 {strides = array<i32>} : memref<1x24x32xf32, #tpu.memory_space<vmem>>, vector<1x3x32xf32>,
    %c4_i32 = arith.constant 4 : i32
    %53 = arith.addi %0, %c4_i32 : i32
    %c7_i32_22 = arith.constant 7 : i32
    %54 = arith.minsi %53, %c7_i32_22 : i32
    %55 = arith.index_cast %arg0 : i32 to index
    %56 = arith.index_cast %54 : i32 to index
    %57 = memref.load %arg2[%55, %56] : memref<2x8xi32, #tpu.memory_space<smem>>
    %c0_i32_23 = arith.constant 0 : i32
    %c16_i32_24 = arith.constant 16 : i32
    %58 = arith.maxsi %c0_i32_23, %57 : i32
    %59 = arith.minsi %c16_i32_24, %58 : i32
    %60 = arith.index_cast %59 : i32 to index
    %c0_25 = arith.constant 0 : index
    %61 = vector.load %arg3[%60, %c0_25] : memref<17x32xf32, #tpu.memory_space<vmem>>, vector<1x32xf32>
    %62 = vector.shape_cast %61 : vector<1x32xf32> to vector<1x32xf32>
    %63 = vector.broadcast %62 : vector<1x32xf32> to vector<3x32xf32>
    %64 = vector.shape_cast %63 : vector<3x32xf32> to vector<1x3x32xf32>
    %c0_26 = arith.constant 0 : index
    %c12 = arith.constant 12 : index
    %c0_27 = arith.constant 0 : index
    %65 = vector.load %arg4[%c0_26, %c12, %c0_27] : memref<1x24x32xf32, #tpu.memory_space<vmem>>, vector<1x3x32xf32>
    tpu.vector_store %arg4[%c0_26, %c12, %c0_27], %64 {strides = array<i32>} : memref<1x24x32xf32, #tpu.memory_space<vmem>>, vector<1x3x32xf32>,
    %c5_i32 = arith.constant 5 : i32
    %66 = arith.addi %0, %c5_i32 : i32
    %c7_i32_28 = arith.constant 7 : i32
    %67 = arith.minsi %66, %c7_i32_28 : i32
    %68 = arith.index_cast %arg0 : i32 to index
    %69 = arith.index_cast %67 : i32 to index
    %70 = memref.load %arg2[%68, %69] : memref<2x8xi32, #tpu.memory_space<smem>>
    %c0_i32_29 = arith.constant 0 : i32
    %c16_i32_30 = arith.constant 16 : i32
    %71 = arith.maxsi %c0_i32_29, %70 : i32
    %72 = arith.minsi %c16_i32_30, %71 : i32
    %73 = arith.index_cast %72 : i32 to index
    %c0_31 = arith.constant 0 : index
    %74 = vector.load %arg3[%73, %c0_31] : memref<17x32xf32, #tpu.memory_space<vmem>>, vector<1x32xf32>
    %75 = vector.shape_cast %74 : vector<1x32xf32> to vector<1x32xf32>
    %76 = vector.broadcast %75 : vector<1x32xf32> to vector<3x32xf32>
    %77 = vector.shape_cast %76 : vector<3x32xf32> to vector<1x3x32xf32>
    %c0_32 = arith.constant 0 : index
    %c15 = arith.constant 15 : index
    %c0_33 = arith.constant 0 : index
    %78 = vector.load %arg4[%c0_32, %c15, %c0_33] : memref<1x24x32xf32, #tpu.memory_space<vmem>>, vector<1x3x32xf32>
    tpu.vector_store %arg4[%c0_32, %c15, %c0_33], %77 {strides = array<i32>} : memref<1x24x32xf32, #tpu.memory_space<vmem>>, vector<1x3x32xf32>,
    %c6_i32 = arith.constant 6 : i32
    %79 = arith.addi %0, %c6_i32 : i32
    %c7_i32_34 = arith.constant 7 : i32
    %80 = arith.minsi %79, %c7_i32_34 : i32
    %81 = arith.index_cast %arg0 : i32 to index
    %82 = arith.index_cast %80 : i32 to index
    %83 = memref.load %arg2[%81, %82] : memref<2x8xi32, #tpu.memory_space<smem>>
    %c0_i32_35 = arith.constant 0 : i32
    %c16_i32_36 = arith.constant 16 : i32
    %84 = arith.maxsi %c0_i32_35, %83 : i32
    %85 = arith.minsi %c16_i32_36, %84 : i32
    %86 = arith.index_cast %85 : i32 to index
    %c0_37 = arith.constant 0 : index
    %87 = vector.load %arg3[%86, %c0_37] : memref<17x32xf32, #tpu.memory_space<vmem>>, vector<1x32xf32>
    %88 = vector.shape_cast %87 : vector<1x32xf32> to vector<1x32xf32>
    %89 = vector.broadcast %88 : vector<1x32xf32> to vector<3x32xf32>
    %90 = vector.shape_cast %89 : vector<3x32xf32> to vector<1x3x32xf32>
    %c0_38 = arith.constant 0 : index
    %c18 = arith.constant 18 : index
    %c0_39 = arith.constant 0 : index
    %91 = vector.load %arg4[%c0_38, %c18, %c0_39] : memref<1x24x32xf32, #tpu.memory_space<vmem>>, vector<1x3x32xf32>
    tpu.vector_store %arg4[%c0_38, %c18, %c0_39], %90 {strides = array<i32>} : memref<1x24x32xf32, #tpu.memory_space<vmem>>, vector<1x3x32xf32>,
    %c7_i32_40 = arith.constant 7 : i32
    %92 = arith.addi %0, %c7_i32_40 : i32
    %c7_i32_41 = arith.constant 7 : i32
    %93 = arith.minsi %92, %c7_i32_41 : i32
    %94 = arith.index_cast %arg0 : i32 to index
    %95 = arith.index_cast %93 : i32 to index
    %96 = memref.load %arg2[%94, %95] : memref<2x8xi32, #tpu.memory_space<smem>>
    %c0_i32_42 = arith.constant 0 : i32
    %c16_i32_43 = arith.constant 16 : i32
    %97 = arith.maxsi %c0_i32_42, %96 : i32
    %98 = arith.minsi %c16_i32_43, %97 : i32
    %99 = arith.index_cast %98 : i32 to index
    %c0_44 = arith.constant 0 : index
    %100 = vector.load %arg3[%99, %c0_44] : memref<17x32xf32, #tpu.memory_space<vmem>>, vector<1x32xf32>
    %101 = vector.shape_cast %100 : vector<1x32xf32> to vector<1x32xf32>
    %102 = vector.broadcast %101 : vector<1x32xf32> to vector<3x32xf32>
    %103 = vector.shape_cast %102 : vector<3x32xf32> to vector<1x3x32xf32>
    %c0_45 = arith.constant 0 : index
    %c21 = arith.constant 21 : index
    %c0_46 = arith.constant 0 : index
    %104 = vector.load %arg4[%c0_45, %c21, %c0_46] : memref<1x24x32xf32, #tpu.memory_space<vmem>>, vector<1x3x32xf32>
    tpu.vector_store %arg4[%c0_45, %c21, %c0_46], %103 {strides = array<i32>} : memref<1x24x32xf32, #tpu.memory_space<vmem>>, vector<1x3x32xf32>,
    return
  }
  func.func @transform_0(%arg0: i32, %arg1: i32, %arg2: memref<2x8xi32, #tpu.memory_space<smem>>) -> (i32, i32) {
    %c0_i32 = arith.constant 0 : i32
    %c0_i32_0 = arith.constant 0 : i32
    %c0_i32_1 = arith.constant 0 : i32
    return %c0_i32, %c0_i32_0 : i32, i32
  }
  func.func @transform_1(%arg0: i32, %arg1: i32, %arg2: memref<2x8xi32, #tpu.memory_space<smem>>) -> (i32, i32, i32) {
    %c0_i32 = arith.constant 0 : i32
    %c0_i32_0 = arith.constant 0 : i32
    return %arg0, %arg1, %c0_i32 : i32, i32, i32
  }
}

</mosaic_0001>

<bundles_post_ra>
// kernel: tpu_custom_call.1
= control target key start
LH: loop header
LB: loop body
LE: loop exit
PB: predicated region body
PF: predicated region fallthrough
CT: control target
= control target key end

     0   :  { %s903_s0 = inlined_call_operand.hbm [shape: s32[2,8], index: 0, kind: input, shape index: {}]   ;;  %s904_s1 = inlined_call_operand.hbm [shape: f32[17,32], index: 1, kind: input, shape index: {}]   ;;  %s905_s2 = inlined_call_operand.hbm [shape: f32[2,24,32], index: 2, kind: output, shape index: {}]  }
   0x1   :  { %s558_s11 = scalar_lea.hbm %s903_s0, 32 }
   0x2   :  { %p559_p0 = scmp.ne.s32.totalorder %s903_s0, %s558_s11  ;;  %p562_p1 = scmp.lt.u32.totalorder %s558_s11, %s903_s0 }
   0x4   :  { %p564_p2 = pnand %p562_p1, %p559_p0 }
   0x6   :  { %567 = shalt.err (!%p564_p2)  }
   0x7   :  { %s682_s16 = smov [#allocation3]  }
   0x8   :  { %8 = dma.hbm_to_smem %s903_s0, 32, %s682_s16, [#allocation2] }
   0x9   :  { %648 = dma.done.wait [#allocation2], 32 }
   0xa   :  { %649 = vsyncadd [#allocation2], 4294967264 }
   0xb   :  { %10 = sfence }
   0xc   :  { %11 = vsyncpa [#allocation5], 0 }
   0xd   :  { %12 = vsyncpa [#allocation6], 0 }
   0xe   :  { %14 = vsyncpa [#allocation6 + $0x1], 0  ;;  %s716_s19 = smov 0   ;;  %s718_s20 = smov 0  }
   0xf   :  { %s720_s21 = smov 0   ;;  %s722_s22 = smov 0  }
  0x10   :  { %s724_s23 = smov 0   ;;  %s726_s24 = smov 0  }
  0x11 LB: > { %s404_s0 = sadd.s32 4294967295, %s680_s24   ;;  %s405_s25 = sadd.s32 4294967294, %s680_s24   ;;  %s680_s24 = sphi %s726_s24, %s20_s24   ;;  %s676_s23 = sphi %s724_s23, %s923_s23   ;;  %s672_s22 = sphi %s722_s22, %s922_s22   ;;  %s668_s21 = sphi %s720_s21, %s921_s21   ;;  %s664_s20 = sphi %s718_s20, %s920_s20   ;;  %s660_s19 = sphi %s716_s19, %s919_s19  }
  0x12   : > { %s32_s26 = sadd.s32 1, %s676_s23  ;;  %s62_s27 = sadd.s32 1, %s668_s21 }
  0x13   : > { %p34_p3 = scmp.ge.s32.totalorder %s32_s26, 2  ;;  %p72_p4 = scmp.ne.s32.totalorder %s668_s21, %s664_s20 }
  0x14   : > { %p73_p5 = scmp.eq.s32.totalorder %s404_s0, 1  ;;  %p78_p6 = scmp.ne.s32.totalorder %s664_s20, %s660_s19 }
  0x15   : > { %s925_s26 = smov (%p34_p3, %s32_s26), 0  ;;  %p79_p8 = scmp.eq.s32.totalorder %s405_s25, 1 }
  0x16   : > { %p756_p7 = por %p73_p5, %p72_p4  ;;  %s57_s29 = ssub.s32 %s676_s23, %s925_s26 }
  0x17   : > { %p406_p9 = scmp.ge.s32.totalorder %s680_s24, 1  ;;  %p60_p10 = scmp.eq.s32.totalorder %s57_s29, 0 }
  0x18   : > { %s910_s28 = scalar_select %p756_p7, 1, 0 }
  0x19   : > { %p763_p11 = por %p79_p8, %p78_p6  ;;  %p86_p12 = scmp.lt.s32.totalorder %s680_s24, 3 }
  0x1a   : > { %s769_s3 = scalar_select %p60_p10, %s668_s21, %s62_s27  }
  0x1b   : > { %s911_s30 = scalar_select %p763_p11, 1, 0 }
  0x1c   : > { %p771_p13 = pnand %p406_p9, %p86_p12  ;;  %p775_p0 = scmp.eq.s32.totalorder %s404_s0, 0 }
  0x1d   : > { %s683_s6 = smov [#allocation4]   ;;  %s568_s11 = scalar_lea.hbm %s904_s1, 384 }
  0x1e   : > { %s912_s4 = scalar_select %p771_p13, 1, 0 }
  0x1f   : > { %s913_s5 = scalar_select %p775_p0, 1, 0 }
  0x20   : > { %p493_p1 = pneg %p771_p13  ;;  %s98_s7 = sshll.u32 %s683_s6, 4  ;;  %s99_s7 = int_to_ptr.vmem [resolvable:$true] %s98_s7 }
  0x21   : > { %p569_p3 = scmp.ne.s32.totalorder %s904_s1, %s568_s11  ;;  %p575_p8 = scmp.lt.u32.totalorder %s568_s11, %s904_s1 }
  0x22   : > { %p783_p2 = pnand %p775_p0, %p493_p1 }
  0x24   : > { %p570_p4 = pneg %p783_p2 }
  0x26   : > { %p571_p5 = pnand %p570_p4, %p569_p3 }
  0x28   : > { %p572_p6 = pneg %p571_p5 }
  0x2a   : > { %p577_p9 = pnand %p575_p8, %p572_p6 }
  0x2c   : > { %580 = shalt.err (!%p577_p9)
}
  0x2d   : > { %s581_s16 = scalar_lea.vmem %s99_s7, 384  ;;  %p589_p11 = scmp.lt.s32.totalorder %s99_s7, %s99_s7 }
  0x2e   : > { %p582_p10 = scmp.ne.s32.totalorder %s99_s7, %s581_s16  ;;  %p590_p7 = scmp.lt.s32.totalorder %s581_s16, %s581_s16 }
  0x30   : > { %p584_p12 = pnand %p582_p10, %p570_p4  ;;  %p591_p0 = por %p590_p7, %p589_p11 }
  0x32   : > { %p585_p1 = pneg %p584_p12 }
  0x34   : > { %p592_p13 = pnand %p591_p0, %p585_p1 }
  0x36   : > { %595 = shalt.err (!%p592_p13)
}
  0x37   : > { %s684_s17 = smov 128   ;;  %s685_s18 = smov 8  }
  0x38   : > { %496 = dma.hbm_to_vmem [thread:$0]  (!%p783_p2), %s904_s1, 384, %s99_s7, [#allocation5], %s684_s17, %s684_s17, %s685_s18  }
  0x39   : > { %p915_p3 = scmp.ne.s32.totalorder %s912_s4, 0 }
  0x3a   : > { %p916_p5 = scmp.ne.s32.totalorder (!%p915_p3), %s913_s5, 0 }
  0x3b   : > { %114 = sbr.rel (%p915_p3) target bundleno = 124 (0x7c), region = 24 }
  0x42   : > { %651 = dma.done.wait (%p916_p5), [#allocation5], 384  }
  0x43   : > { %653 = vsyncadd (%p916_p5), [#allocation5], 4294966912  ;;  %s126_s27 = sand.u32 1, %s664_s20   ;;  %s811_s29 = sshll.u32 %s672_s22, 7  ;;  %vm151_vm0 = vcmask 256000  }
  0x44   : > { %s485_s4 = smul.u32 24, %s126_s27  ;;  %s140_s6 = sld [smem:[#allocation3 + %s811_s29]] }
  0x45   : > { %s162_s7 = sadd.s32 1, %s811_s29  ;;  %s184_s9 = sadd.s32 2, %s811_s29 }
  0x46   : > { %s163_s8 = sld [smem:[#allocation3 + %s162_s7]]  ;;  %s206_s5 = sadd.s32 3, %s811_s29 }
  0x47   : > { %s185_s10 = sld [smem:[#allocation3 + %s184_s9]]  ;;  %s228_s11 = sadd.s32 4, %s811_s29 }
  0x48   : > { %s207_s12 = sld [smem:[#allocation3 + %s206_s5]]  ;;  %s822_s15 = scalar_lea.vmem [#allocation7], %s485_s4 }
  0x49   : > { %s820_s13 = sld [smem:[#allocation3 + %s228_s11]]  ;;  %s250_s4 = sadd.s32 5, %s811_s29 }
  0x4a   : > { %p141_p7 = scmp.gt.s32.totalorder %s140_s6, 0  ;;  %p411_p11 = scmp.lt.s32.totalorder %s140_s6, 16 }
  0x4b   : > { %s251_s7 = sld [smem:[#allocation3 + %s250_s4]]  ;;  %s294_s9 = sadd.s32 7, %s811_s29 }
  0x4c   : > { %s927_s6 = smov (!%p141_p7, %s140_s6), 0  ;;  %p164_p13 = scmp.gt.s32.totalorder %s163_s8, 0 }
  0x4d   : > { %p418_p0 = scmp.lt.s32.totalorder %s163_s8, 16  ;;  %s929_s6 = smov (!%p411_p11, %s927_s6), 16 }
  0x4e   : > { %s931_s8 = smov (!%p164_p13, %s163_s8), 0  ;;  %p186_p2 = scmp.gt.s32.totalorder %s185_s10, 0 }
  0x4f   : > { %s145_s14 = scalar_lea.vmem [#allocation4], %s929_s6  ;;  %s933_s8 = smov (!%p418_p0, %s931_s8), 16 }
  0x50   : > { %v416_v0 = vld [vmem:[%s145_s14] ss:$0 sm:$0xff]  ;;  %s187_s16 = scalar_select %p186_p2, %s185_s10, 0 }
  0x51   : > { %152 = vst.msk [vmem:[%s822_s15] sm:$0x7] %vm151_vm0, %v416_v0  ;;  %p425_p4 = scmp.lt.s32.totalorder %s185_s10, 16  ;;  %s168_s17 = scalar_lea.vmem [#allocation4], %s933_s8 }
  0x52   : > { %v423_v1 = vld [vmem:[%s168_s17] ss:$0 sm:$0xff]  ;;  %p208_p6 = scmp.gt.s32.totalorder %s207_s12, 0  ;;  %p432_p8 = scmp.lt.s32.totalorder %s207_s12, 16 }
  0x53   : > { %174 = vst.msk [vmem:[%s822_s15 + $0x3] sm:$0x7] %vm151_vm0, %v423_v1  ;;  %s935_s16 = smov (!%p425_p4, %s187_s16), 16  ;;  %p230_p9 = scmp.gt.s32.totalorder %s820_s13, 0 }
  0x54   : > { %s937_s12 = smov (!%p208_p6, %s207_s12), 0  ;;  %s190_s18 = scalar_lea.vmem [#allocation4], %s935_s16 }
  0x55   : > { %v430_v2 = vld [vmem:[%s190_s18] ss:$0 sm:$0xff]  ;;  %s939_s12 = smov (!%p432_p8, %s937_s12), 16  ;;  %p439_p10 = scmp.lt.s32.totalorder %s820_s13, 16 }
  0x56   : > { %196 = vst.msk [vmem:[%s822_s15 + $0x6] sm:$0x7] %vm151_vm0, %v430_v2  ;;  %s231_s0 = scalar_select %p230_p9, %s820_s13, 0 }
  0x57   : > { %s212_s25 = scalar_lea.vmem [#allocation4], %s939_s12  ;;  %s272_s6 = sadd.s32 6, %s811_s29 }
  0x58   : > { %v437_v3 = vld [vmem:[%s212_s25] ss:$0 sm:$0xff]  ;;  %s941_s0 = smov (!%p439_p10, %s231_s0), 16  ;;  %s273_s8 = sld [smem:[#allocation3 + %s272_s6]] }
  0x59   : > { %218 = vst.msk [vmem:[%s822_s15 + $0x9] sm:$0x7] %vm151_vm0, %v437_v3  ;;  %s234_s10 = scalar_lea.vmem [#allocation4], %s941_s0  ;;  %s295_s5 = sld [smem:[#allocation3 + %s294_s9]] }
  0x5a   : > { %v444_v4 = vld [vmem:[%s234_s10] ss:$0 sm:$0xff]  ;;  %s323_s11 = sshll.u32 %s822_s15, 4  ;;  %s486_s14 = smul.u32 384, %s672_s22  ;;  %s844_s11 = int_to_ptr.vmem [resolvable:$true] %s323_s11 }
  0x5b   : > { %240 = vst.msk [vmem:[%s822_s15 + $0xc] sm:$0x7] %vm151_vm0, %v444_v4  ;;  %p252_p12 = scmp.gt.s32.totalorder %s251_s7, 0  ;;  %p446_p1 = scmp.lt.s32.totalorder %s251_s7, 16 }
  0x5c   : > { %s851_s16 = scalar_lea.hbm %s905_s2, %s486_s14  ;;  %s857_s18 = scalar_lea.sflag [#allocation6], %s126_s27 }
  0x5d   : > { %s943_s7 = smov (!%p252_p12, %s251_s7), 0  ;;  %s596_s0 = scalar_lea.vmem %s844_s11, 384 }
  0x5e   : > { %p274_p3 = scmp.gt.s32.totalorder %s273_s8, 0  ;;  %p453_p5 = scmp.lt.s32.totalorder %s273_s8, 16 }
  0x5f   : > { %s947_s7 = smov (!%p446_p1, %s943_s7), 16  ;;  %p296_p7 = scmp.gt.s32.totalorder %s295_s5, 0 }
  0x60   : > { %s945_s8 = smov (!%p274_p3, %s273_s8), 0  ;;  %s256_s29 = scalar_lea.vmem [#allocation4], %s947_s7 }
  0x61   : > { %s949_s8 = smov (!%p453_p5, %s945_s8), 16  ;;  %v451_v5 = vld [vmem:[%s256_s29] ss:$0 sm:$0xff]  ;;  %p460_p11 = scmp.lt.s32.totalorder %s295_s5, 16 }
  0x62   : > { %262 = vst.msk [vmem:[%s822_s15 + $0xf] sm:$0x7] %vm151_vm0, %v451_v5  ;;  %s278_s12 = scalar_lea.vmem [#allocation4], %s949_s8  ;;  %s951_s5 = smov (!%p296_p7, %s295_s5), 0 }
  0x63   : > { %v458_v6 = vld [vmem:[%s278_s12] ss:$0 sm:$0xff]  ;;  %s953_s5 = smov (!%p460_p11, %s951_s5), 16  ;;  %p597_p13 = scmp.ne.s32.totalorder %s844_s11, %s596_s0 }
  0x64   : > { %284 = vst.msk [vmem:[%s822_s15 + $0x12] sm:$0x7] %vm151_vm0, %v458_v6  ;;  %s300_s17 = scalar_lea.vmem [#allocation4], %s953_s5  ;;  %p917_p0 = scmp.ne.s32.totalorder %s910_s28, 0 }
  0x65   : > { %v465_v7 = vld [vmem:[%s300_s17] ss:$0 sm:$0xff]  ;;  %s686_s25 = smov [#allocation7]  }
  0x66   : > { %306 = vst.msk [vmem:[%s822_s15 + $0x15] sm:$0x7] %vm151_vm0, %v465_v7  ;;  %p598_p2 = pnand %p597_p13, %p917_p0  ;;  %s600_s4 = sshll.u32 %s686_s25, 4  ;;  %s601_s4 = int_to_ptr.vmem [resolvable:$false] %s600_s4 }
  0x67   : > { %s602_s6 = scalar_lea.vmem %s601_s4, 768  ;;  %p603_p6 = scmp.lt.s32.totalorder %s844_s11, %s601_s4 }
  0x68   : > { %p599_p4 = pneg %p598_p2  ;;  %p604_p8 = scmp.lt.s32.totalorder %s602_s6, %s596_s0 }
  0x6a   : > { %p605_p9 = por %p604_p8, %p603_p6 }
  0x6c   : > { %p606_p10 = pnand %p605_p9, %p599_p4 }
  0x6e   : > { %609 = shalt.err (!%p606_p10)
}
  0x6f   : > { %s610_s27 = scalar_lea.hbm %s851_s16, 384  ;;  %s614_s8 = scalar_lea.hbm %s905_s2, 768 }
  0x70   : > { %p611_p12 = scmp.ne.s32.totalorder %s851_s16, %s610_s27  ;;  %p615_p5 = scmp.lt.u32.totalorder %s851_s16, %s905_s2 }
  0x71   : > { %p616_p7 = scmp.lt.u32.totalorder %s614_s8, %s610_s27  ;;  %p618_p13 = scmp.lt.u32.totalorder %s610_s27, %s851_s16 }
  0x72   : > { %p612_p1 = pnand %p611_p12, %p917_p0 }
  0x73   : > { %p617_p11 = por %p616_p7, %p615_p5 }
  0x74   : > { %p613_p3 = pneg %p612_p1 }
  0x75   : > { %p619_p2 = por %p618_p13, %p617_p11 }
  0x77   : > { %p620_p4 = pnand %p619_p2, %p613_p3 }
  0x79   : > { %623 = shalt.err (!%p620_p4)
}
  0x7a   : > { %s687_s5 = smov 128   ;;  %s688_s14 = smov 8  }
  0x7b   : > { %491 = dma.vmem_to_hbm [thread:$0]  (%p917_p0), %s844_s11, 384, %s851_s16, %s857_s18, %s687_s5, %s687_s5, %s688_s14  }
  0x7c PF: > { %p503_p6 = scmp.ge.s32.totalorder %s680_s24, 2  ;;  %s338_s29 = sand.u32 1, %s660_s19  }
  0x7d   : > { %p918_p8 = scmp.ne.s32.totalorder %s911_s30, 0  ;;  %s339_s12 = scalar_lea.sflag [#allocation6], %s338_s29 }
  0x7f   : > { %p498_p9 = pnand %p503_p6, %p918_p8 }
  0x81   : > { %655 = dma.done.wait (!%p498_p9), %s339_s12, 384  }
  0x82   : > { %657 = vsyncadd (!%p498_p9), %s339_s12, 4294966912  ;;  %s20_s24 = sadd.s32 1, %s680_s24   ;;  %s919_s19 = smov %s664_s20 }
  0x83   : > { %p17_p10 = scmp.ge.s32.totalorder %s20_s24, 4   ;;  %s920_s20 = smov %s668_s21 }
  0x84   : > { %s921_s21 = smov %s769_s3  ;;  %s922_s22 = smov %s676_s23 }
  0x85   : > { %s923_s23 = smov %s925_s26  ;;  %19 = sbr.rel (!%p17_p10) target bundleno = 17 (0x11), region = 69 }
  0x8c   :  { %344 = vsyncpa [#allocation5], 1 }
  0x8d   :  { %346 = vsyncpa [#allocation5 + $0x1], 1 }
  0x8e   :  { %347 = vsyncpa [#allocation6], 1 }
  0x8f   :  { %349 = vsyncpa [#allocation6 + $0x1], 1 }

</bundles_post_ra>
